<compile_context>
chip_gen: v6e
topology: v6e:2x2x1
jax: 0.10.0
libtpu: 0.0.40
codegen_flags: <defaults>
</compile_context>

<pallas_src>
import functools

import numpy as np
import jax
import jax.numpy as jnp
from jax import lax
from jax.experimental import pallas as pl
from jax.experimental.pallas import tpu as pltpu


# ----------------------------------------------------------------------------
# Pallas kernel: one MXU matmul (im2col rows x scale-folded weights) + bias + ReLU
# ----------------------------------------------------------------------------
def _conv_bias_act_kernel(x_ref, w_ref, b_ref, o_ref, *, relu):
    # x_ref: (TM, K)   bf16 im2col rows for this tile
    # w_ref: (K, TN)   bf16 flattened (kh, kw, cin) -> cout weights (BN scale folded)
    # b_ref: (1, TN)   f32 folded BN bias (or conv bias)
    # o_ref: (TM, TN)  output tile (lane-dense)
    y = jnp.dot(x_ref[...], w_ref[...], preferred_element_type=jnp.float32)
    y = y + b_ref[...]
    if relu:
        y = jnp.maximum(y, 0.0)
    o_ref[...] = y.astype(o_ref.dtype)


def _round_up(x, m):
    return (x + m - 1) // m * m


def _pick_tiles(M, K, Cp, out_bytes):
    """Generation-aware tile selection.

    Fits the double-buffered per-step working set under a 12 MiB budget
    (below v5e's 16 MiB default scoped-VMEM limit and well inside v7x's
    64 MiB physical VMEM), queried from the actual chip when available.
    """
    tn = 256 if Cp % 256 == 0 else 128   # 2x256x256 MXU on v6e/v7x; 128 is fine on v5e
    try:
        vmem_cap = int(getattr(pltpu.get_tpu_info(), "vmem_capacity_bytes", 64 << 20))
    except Exception:  # interpret mode / non-TPU tracing fallback
        vmem_cap = 64 << 20
    budget = min(vmem_cap // 4, 12 << 20)

    def step_bytes(tm):
        # double-buffered cols (bf16) + weight tile (bf16) + out tile + bias
        return 2 * (tm * K * 2 + K * tn * 2 + tm * tn * out_bytes) + 2 * tn * 4

    tm = 512  # review default; do not grow past this on v7x
    while tm > 8 and step_bytes(tm) > budget:
        tm //= 2
    if M <= tm:
        tm = max(8, _round_up(M, 8))
    return tm, tn


def conv2d_bn_act(x, w, scale, bias, *, stride=1, padding=0, dilation=1,
                  relu=True, out_dtype=None):
    """Fused conv2d (stride/padding/dilation, groups=1) + folded BN + ReLU.

    x: (N, H, W, Cin) NHWC;  w: (KH, KW, Cin, Cout);  scale/bias: (Cout,)
    """
    N, H, W, Cin = x.shape
    KH, KW, Cin_w, Cout = w.shape
    assert Cin_w == Cin, "grouped conv (groups > 1) not supported"
    sh, sw = (stride, stride) if isinstance(stride, int) else tuple(stride)
    ph, pw = (padding, padding) if isinstance(padding, int) else tuple(padding)
    dh, dw = (dilation, dilation) if isinstance(dilation, int) else tuple(dilation)

    Hout = (H + 2 * ph - dh * (KH - 1) - 1) // sh + 1
    Wout = (W + 2 * pw - dw * (KW - 1) - 1) // sw + 1
    out_dtype = x.dtype if out_dtype is None else out_dtype
    out_bytes = jnp.dtype(out_dtype).itemsize

    # bf16 BEFORE pad + im2col: halves every wrapper materialization and the
    # kernel's input DMA bytes (dominant HBM stream).
    xb = x.astype(jnp.bfloat16)
    xp = jnp.pad(xb, ((0, 0), (ph, ph), (pw, pw), (0, 0)))

    # im2col packed channel-last: one lane-dense K = KH*KW*Cin contraction.
    taps = []
    for kh in range(KH):
        for kw in range(KW):
            h0, w0 = kh * dh, kw * dw
            taps.append(xp[:, h0:h0 + sh * (Hout - 1) + 1:sh,
                           w0:w0 + sw * (Wout - 1) + 1:sw, :])
    cols = jnp.concatenate(taps, axis=-1) if len(taps) > 1 else taps[0]

    K = KH * KW * Cin
    M = N * Hout * Wout
    cols = cols.reshape(M, K)

    # Lane-dense output: pad Cout to a multiple of 128 (zero weight/bias pad).
    Cp = _round_up(Cout, 128)
    tm, tn = _pick_tiles(M, K, Cp, out_bytes)

    # Fold BN scale into the f32 weights, then cast to bf16 for the MXU.
    wf = w.reshape(K, Cout).astype(jnp.float32) * scale.astype(jnp.float32)[None, :]
    if Cp != Cout:
        wf = jnp.pad(wf, ((0, 0), (0, Cp - Cout)))
    wf = wf.astype(jnp.bfloat16)
    b2 = jnp.pad(bias.astype(jnp.float32), (0, Cp - Cout)).reshape(1, Cp)

    # Row pad (already bf16, after the cast) so the grid divides evenly.
    Mp = _round_up(M, tm)
    if Mp != M:
        cols = jnp.pad(cols, ((0, Mp - M), (0, 0)))

    grid = (Mp // tm, Cp // tn)  # cols block invariant along inner (Cout) axis
    cost = pl.CostEstimate(
        flops=2 * M * K * Cp,
        transcendentals=0,
        bytes_accessed=Mp * K * 2 + (Mp // tm) * K * Cp * 2 + Mp * Cp * out_bytes)

    out = pl.pallas_call(
        functools.partial(_conv_bias_act_kernel, relu=relu),
        out_shape=jax.ShapeDtypeStruct((Mp, Cp), out_dtype),
        grid=grid,
        in_specs=[
            pl.BlockSpec((tm, K), lambda i, j: (i, 0)),
            pl.BlockSpec((K, tn), lambda i, j: (0, j)),
            pl.BlockSpec((1, tn), lambda i, j: (0, j)),
        ],
        out_specs=pl.BlockSpec((tm, tn), lambda i, j: (i, j)),
        compiler_params=pltpu.CompilerParams(
            dimension_semantics=("parallel", "parallel")),
        cost_estimate=cost,
    )(cols, wf, b2)

    return out[:M, :Cout].reshape(N, Hout, Wout, Cout)


# ----------------------------------------------------------------------------
# BasicConv: parameters, folding, forward
# ----------------------------------------------------------------------------
def init_basic_conv(key, in_planes, out_planes, kernel_size, *, stride=1,
                    padding=0, dilation=1, groups=1, relu=True, bn=True):
    assert groups == 1, "grouped conv not supported"
    kh, kw = (kernel_size, kernel_size) if isinstance(kernel_size, int) \
        else tuple(kernel_size)
    keys = jax.random.split(key, 6)
    fan_in = in_planes * kh * kw
    p = {
        "cfg": dict(stride=stride, padding=padding, dilation=dilation,
                    relu=relu, bn=bn),
        "w": jax.random.normal(keys[0], (kh, kw, in_planes, out_planes),
                               jnp.float32) / np.sqrt(fan_in),
    }
    if bn:
        p["gamma"] = 1.0 + 0.1 * jax.random.normal(keys[1], (out_planes,), jnp.float32)
        p["beta"] = 0.1 * jax.random.normal(keys[2], (out_planes,), jnp.float32)
        p["mean"] = 0.1 * jax.random.normal(keys[3], (out_planes,), jnp.float32)
        p["var"] = 1.0 + 0.1 * jax.random.uniform(keys[4], (out_planes,), jnp.float32)
    else:
        p["bias"] = 0.1 * jax.random.normal(keys[5], (out_planes,), jnp.float32)
    return p


def fold_scale_bias(p, eps=1e-5):
    cout = p["w"].shape[-1]
    if p["cfg"]["bn"]:
        scale = p["gamma"] * lax.rsqrt(p["var"] + eps)
        bias = p["beta"] - p["mean"] * scale
    else:
        scale = jnp.ones((cout,), jnp.float32)
        bias = p["bias"].astype(jnp.float32)
    return scale, bias


def basic_conv(x, p, out_dtype=None):
    """Pallas forward of BasicConv: conv2d -> (BN or bias) -> optional ReLU."""
    cfg = p["cfg"]
    scale, bias = fold_scale_bias(p)
    return conv2d_bn_act(x, p["w"], scale, bias, stride=cfg["stride"],
                         padding=cfg["padding"], dilation=cfg["dilation"],
                         relu=cfg["relu"], out_dtype=out_dtype)


def basic_conv_reference(x, p):
    """Pure-JAX (XLA) reference for correctness checking (f32 math)."""
    cfg = p["cfg"]
    xf = x.astype(jnp.float32)
    dn = lax.conv_dimension_numbers(xf.shape, p["w"].shape, ("NHWC", "HWIO", "NHWC"))
    y = lax.conv_general_dilated(
        xf, p["w"],
        window_strides=(cfg["stride"], cfg["stride"]),
        padding=[(cfg["padding"], cfg["padding"])] * 2,
        rhs_dilation=(cfg["dilation"], cfg["dilation"]),
        dimension_numbers=dn)
    scale, bias = fold_scale_bias(p)
    y = y * scale + bias
    if cfg["relu"]:
        y = jnp.maximum(y, 0.0)
    return y


# ----------------------------------------------------------------------------
if __name__ == "__main__":
    key = jax.random.PRNGKey(0)
    kx, k1, k2, k3, k4 = jax.random.split(key, 5)

    N, H, W, Cin = 2, 16, 16, 16
    x = jax.random.normal(kx, (N, H, W, Cin), jnp.float32)

    # A small chain exercising the BasicConv configurations:
    #   k=3 pad=1 BN+ReLU | k=3 stride=2 pad=1 BN+ReLU | k=3 pad=2 dil=2 BN no-ReLU
    #   | k=1 no-BN (conv bias) + ReLU
    p1 = init_basic_conv(k1, 16, 32, 3, padding=1, relu=True, bn=True)
    p2 = init_basic_conv(k2, 32, 48, 3, stride=2, padding=1, relu=True, bn=True)
    p3 = init_basic_conv(k3, 48, 32, 3, padding=2, dilation=2, relu=False, bn=True)
    p4 = init_basic_conv(k4, 32, 8, 1, relu=True, bn=False)

    layers = (p1, p2, p3, p4)
    y = x
    for li, p in enumerate(layers):
        # Intermediate activations stay bf16 (the next layer casts anyway);
        # the final layer emits f32.
        od = jnp.float32 if li == len(layers) - 1 else jnp.bfloat16
        y_kernel = basic_conv(y, p, out_dtype=od)
        y_ref = basic_conv_reference(y, p)
        np.testing.assert_allclose(np.asarray(y_kernel, dtype=np.float32),
                                   np.asarray(y_ref, dtype=np.float32),
                                   atol=5e-2, rtol=5e-2)
        y = y_kernel

    y = jax.block_until_ready(y)
    assert y.shape == (2, 8, 8, 8)
    assert bool(jnp.isfinite(y).all())
    print("KERNEL_OK")
</pallas_src>

<mosaic_0001>
module attributes {stable_mosaic.version = 11 : i64} {
  func.func @_conv_bias_act_kernel(%arg0: i32, %arg1: i32, %arg2: memref<512x144xbf16, #tpu.memory_space<vmem>>, %arg3: memref<144x128xbf16, #tpu.memory_space<vmem>>, %arg4: memref<1x128xf32, #tpu.memory_space<vmem>>, %arg5: memref<512x128xbf16, #tpu.memory_space<vmem>>) attributes {dimension_semantics = [#tpu.dimension_semantics<parallel>, #tpu.dimension_semantics<parallel>], iteration_bounds = array<i64: 1, 1>, scalar_prefetch = 0 : i64, scratch_operands = 0 : i64, tpu.core_type = #tpu.core_type<tc>, window_params = [{transform_indices = @transform_0, window_bounds = array<i64: 512, 144>}, {transform_indices = @transform_1, window_bounds = array<i64: 144, 128>}, {transform_indices = @transform_2, window_bounds = array<i64: 1, 128>}, {transform_indices = @transform_3, window_bounds = array<i64: 512, 128>}]} {
    %c0 = arith.constant 0 : index
    %c0_0 = arith.constant 0 : index
    %0 = vector.load %arg2[%c0, %c0_0] : memref<512x144xbf16, #tpu.memory_space<vmem>>, vector<512x144xbf16>
    %c0_1 = arith.constant 0 : index
    %c0_2 = arith.constant 0 : index
    %1 = vector.load %arg3[%c0_1, %c0_2] : memref<144x128xbf16, #tpu.memory_space<vmem>>, vector<144x128xbf16>
    %cst = arith.constant dense<0.000000e+00> : vector<512x128xf32>
    %2 = tpu.matmul %0, %1, %cst {dimension_numbers = #tpu.dot_dimension_numbers<[1], [0], [0], [1], [0, 0, 1, 1], [], []>} : vector<512x144xbf16>, vector<144x128xbf16>, vector<512x128xf32> -> vector<512x128xf32>
    %c0_3 = arith.constant 0 : index
    %c0_4 = arith.constant 0 : index
    %3 = vector.load %arg4[%c0_3, %c0_4] : memref<1x128xf32, #tpu.memory_space<vmem>>, vector<1x128xf32>
    %4 = vector.broadcast %3 : vector<1x128xf32> to vector<512x128xf32>
    %5 = arith.addf %2, %4 : vector<512x128xf32>
    %cst_5 = arith.constant 0.000000e+00 : f32
    %6 = vector.broadcast %cst_5 : f32 to vector<512x128xf32>
    %7 = arith.maximumf %5, %6 : vector<512x128xf32>
    %8 = arith.truncf %7 : vector<512x128xf32> to vector<512x128xbf16>
    %c0_6 = arith.constant 0 : index
    %c0_7 = arith.constant 0 : index
    %9 = vector.load %arg5[%c0_6, %c0_7] : memref<512x128xbf16, #tpu.memory_space<vmem>>, vector<512x128xbf16>
    tpu.vector_store %arg5[%c0_6, %c0_7], %8 {strides = array<i32>} : memref<512x128xbf16, #tpu.memory_space<vmem>>, vector<512x128xbf16>,
    return
  }
  func.func @transform_0(%arg0: i32, %arg1: i32) -> (i32, i32) {
    %c0_i32 = arith.constant 0 : i32
    %c0_i32_0 = arith.constant 0 : i32
    return %arg0, %c0_i32 : i32, i32
  }
  func.func @transform_1(%arg0: i32, %arg1: i32) -> (i32, i32) {
    %c0_i32 = arith.constant 0 : i32
    %c0_i32_0 = arith.constant 0 : i32
    return %c0_i32, %arg1 : i32, i32
  }
  func.func @transform_2(%arg0: i32, %arg1: i32) -> (i32, i32) {
    %c0_i32 = arith.constant 0 : i32
    %c0_i32_0 = arith.constant 0 : i32
    return %c0_i32, %arg1 : i32, i32
  }
  func.func @transform_3(%arg0: i32, %arg1: i32) -> (i32, i32) {
    %c0_i32 = arith.constant 0 : i32
    return %arg0, %arg1 : i32, i32
  }
}

</mosaic_0001>

<bundles_post_ra>
// kernel: tpu_custom_call.1
= control target key start
LH: loop header
LB: loop body
LE: loop exit
PB: predicated region body
PF: predicated region fallthrough
CT: control target
= control target key end

     0   :  { %v1807_v1 = vmov 0   ;;  %vm447_vm0 = vcmask 130048   ;;  %s2154_s0 = inlined_call_operand.vmem [shape: bf16[512,144], index: 0, kind: input, shape index: {}]   ;;  %s2155_s1 = inlined_call_operand.vmem [shape: bf16[144,128], index: 1, kind: input, shape index: {}]   ;;  %s2156_s2 = inlined_call_operand.vmem [shape: f32[1,128], index: 2, kind: input, shape index: {}]   ;;  %s2157_s3 = inlined_call_operand.hbm [shape: bf16[512,128], index: 3, kind: output, shape index: {}]  }
   0x1   :  { %v1680_v0 = vld [vmem:[%s2155_s1 + $0x38] sm:$0xff]   ;;  %544 = vmatprep.subr.bf16.mxu0 %v1807_v1  ;;  %1658 = vmatprep.subr.bf16.mxu1 %v1807_v1  ;;  %v1681_v2 = vld [vmem:[%s2155_s1 + $0x30] sm:$0xff]   ;;  %v1682_v3 = vld [vmem:[%s2155_s1 + $0x28] sm:$0xff]  }
   0x2   :  { %545 = vmatpush1.bf16.msra.mxu0 %v1680_v0  ;;  %1667 = vmatpush1.bf16.msra.mxu1 %v1680_v0  ;;  %v1683_v4 = vld [vmem:[%s2155_s1 + $0x20] sm:$0xff]   ;;  %v1684_v7 = vld [vmem:[%s2155_s1 + $0x18] sm:$0xff]   ;;  %v1685_v8 = vld [vmem:[%s2155_s1 + $0x10] sm:$0xff]  }
   0x3   :  { %546 = vmatprep.subr.bf16.mxu0 %v1807_v1  ;;  %1659 = vmatprep.subr.bf16.mxu1 %v1807_v1  ;;  %v1691_v5 = vld [vmem:[%s2154_s0 + $0x4] ss:$8 sps:$4 sm:$0xff]   ;;  %v1689_v12 = vld [vmem:[%s2154_s0] ss:$8 sps:$4 sm:$0xff]   ;;  %v1695_v14 = vld [vmem:[%s2154_s0 + $0x14] ss:$8 sps:$4 sm:$0xff]  }
   0x4   :  { %v1694_v6 = vld [vmem:[%s2154_s0 + $0x104] ss:$8 sps:$4 sm:$0xff]   ;;  %1307 = vmatprep.mubr.msk.bf16.mxu0 %vm447_vm0, %v1691_v5  ;;  %v1692_v13 = vld [vmem:[%s2154_s0 + $0x100] ss:$8 sps:$4 sm:$0xff]   ;;  %v1697_v15 = vld [vmem:[%s2154_s0 + $0x114] ss:$8 sps:$4 sm:$0xff]  }
   0x5   :  { %1323 = vmatprep.mubr.msk.bf16.mxu1 %vm447_vm0, %v1694_v6  ;;  %v1686_v9 = vld [vmem:[%s2155_s1 + $0x8] sm:$0xff]   ;;  %v1687_v10 = vld [vmem:[%s2155_s1] sm:$0xff]   ;;  %v1699_v16 = vld [vmem:[%s2154_s0 + $0x10] ss:$8 sps:$4 sm:$0xff]  }
   0x6   :  { %547 = vmatpush1.bf16.msra.mxu0 %v1681_v2  ;;  %1668 = vmatpush1.bf16.msra.mxu1 %v1681_v2  ;;  %v1688_v11 = vld [vmem:[%s2155_s1 + $0x40] sm:$0xff]   ;;  %v1700_v17 = vld [vmem:[%s2154_s0 + $0x110] ss:$8 sps:$4 sm:$0xff]   ;;  %v1707_v22 = vld [vmem:[%s2154_s0 + $0x34] ss:$8 sps:$4 sm:$0xff]  }
   0x7   :  { %548 = vmatprep.subr.bf16.mxu0 %v1807_v1  ;;  %1660 = vmatprep.subr.bf16.mxu1 %v1807_v1  ;;  %v1701_v18 = vld [vmem:[%s2154_s0 + $0x24] ss:$8 sps:$4 sm:$0xff]   ;;  %v1705_v20 = vld [vmem:[%s2154_s0 + $0x20] ss:$8 sps:$4 sm:$0xff]   ;;  %v1709_v23 = vld [vmem:[%s2154_s0 + $0x134] ss:$8 sps:$4 sm:$0xff]  }
   0x8   :  { %v1703_v19 = vld [vmem:[%s2154_s0 + $0x124] ss:$8 sps:$4 sm:$0xff]   ;;  %v1706_v21 = vld [vmem:[%s2154_s0 + $0x120] ss:$8 sps:$4 sm:$0xff]  }
   0xa   :  { %549 = vmatpush1.bf16.msra.mxu0 %v1682_v3  ;;  %1669 = vmatpush1.bf16.msra.mxu1 %v1682_v3 }
   0xb   :  { %550 = vmatprep.subr.bf16.mxu0 %v1807_v1  ;;  %1661 = vmatprep.subr.bf16.mxu1 %v1807_v1 }
   0xe   :  { %551 = vmatpush1.bf16.msra.mxu0 %v1683_v4  ;;  %1670 = vmatpush1.bf16.msra.mxu1 %v1683_v4 }
   0xf   :  { %552 = vmatprep.subr.bf16.mxu0 %v1807_v1  ;;  %1662 = vmatprep.subr.bf16.mxu1 %v1807_v1 }
  0x12   :  { %553 = vmatpush1.bf16.msra.mxu0 %v1684_v7  ;;  %1671 = vmatpush1.bf16.msra.mxu1 %v1684_v7 }
  0x13   :  { %554 = vmatprep.subr.bf16.mxu0 %v1807_v1  ;;  %1663 = vmatprep.subr.bf16.mxu1 %v1807_v1 }
  0x16   :  { %555 = vmatpush1.bf16.msra.mxu0 %v1685_v8  ;;  %1672 = vmatpush1.bf16.msra.mxu1 %v1685_v8 }
  0x17   :  { %556 = vmatprep.subr.bf16.mxu0 %v1807_v1  ;;  %1664 = vmatprep.subr.bf16.mxu1 %v1807_v1 }
  0x1a   :  { %557 = vmatpush1.bf16.msra.mxu0 %v1686_v9  ;;  %1673 = vmatpush1.bf16.msra.mxu1 %v1686_v9 }
  0x1b   :  { %558 = vmatprep.subr.bf16.mxu0 %v1807_v1  ;;  %1665 = vmatprep.subr.bf16.mxu1 %v1807_v1 }
  0x1e   :  { %559 = vmatpush1.bf16.msra.mxu0 %v1687_v10  ;;  %1674 = vmatpush1.bf16.msra.mxu1 %v1687_v10 }
  0x1f   :  { %574 = vmatprep.subr.bf16.mxu0 %v1807_v1  ;;  %1666 = vmatprep.subr.bf16.mxu1 %v1807_v1 }
  0x22   :  { %575 = vmatpush2.bf16.msra.mxu0 %v1688_v11  ;;  %1675 = vmatpush2.bf16.msra.mxu1 %v1688_v11 }
  0x25   :  { %577 = vmatmul.mubr.bf16.vlgmr.msra.gmra.mxu0 %v1689_v12  ;;  %705 = vmatmul.mubr.bf16.vlgmr.msra.gmra.mxu1 %v1692_v13 }
  0x26   :  { %1308 = vmatprep.mubr.msk.bf16.mxu0 %vm447_vm0, %v1695_v14  ;;  %1324 = vmatprep.mubr.msk.bf16.mxu1 %vm447_vm0, %v1697_v15 }
  0x2d   :  { %585 = vmatmul.mubr.bf16.gmra.mxu0 %v1699_v16  ;;  %713 = vmatmul.mubr.bf16.gmra.mxu1 %v1700_v17 }
  0x2e   :  { %1309 = vmatprep.mubr.msk.bf16.mxu0 %vm447_vm0, %v1701_v18  ;;  %1325 = vmatprep.mubr.msk.bf16.mxu1 %vm447_vm0, %v1703_v19 }
  0x2f   :  { %8 = vsyncpa [#allocation3], 0  ;;  %v1711_v24 = vld [vmem:[%s2154_s0 + $0x30] ss:$8 sps:$4 sm:$0xff]   ;;  %v1713_v26 = vld [vmem:[%s2154_s0 + $0x44] ss:$8 sps:$4 sm:$0xff]  }
  0x30   :  { %v1712_v25 = vld [vmem:[%s2154_s0 + $0x130] ss:$8 sps:$4 sm:$0xff]   ;;  %v1715_v27 = vld [vmem:[%s2154_s0 + $0x144] ss:$8 sps:$4 sm:$0xff]   ;;  %v1717_v28 = vld [vmem:[%s2154_s0 + $0x40] ss:$8 sps:$4 sm:$0xff]  }
  0x31   :  { %v1718_v29 = vld [vmem:[%s2154_s0 + $0x140] ss:$8 sps:$4 sm:$0xff]   ;;  %v1719_v30 = vld [vmem:[%s2154_s0 + $0x54] ss:$8 sps:$4 sm:$0xff]   ;;  %v1723_v32 = vld [vmem:[%s2154_s0 + $0x50] ss:$8 sps:$4 sm:$0xff]  }
  0x32   :  { %v1721_v31 = vld [vmem:[%s2154_s0 + $0x154] ss:$8 sps:$4 sm:$0xff]   ;;  %v1724_v33 = vld [vmem:[%s2154_s0 + $0x150] ss:$8 sps:$4 sm:$0xff]   ;;  %v1725_v34 = vld [vmem:[%s2154_s0 + $0x64] ss:$8 sps:$4 sm:$0xff]  }
  0x33   :  { %v1727_v35 = vld [vmem:[%s2154_s0 + $0x164] ss:$8 sps:$4 sm:$0xff]   ;;  %v1729_v36 = vld [vmem:[%s2154_s0 + $0x60] ss:$8 sps:$4 sm:$0xff]   ;;  %v1731_v38 = vld [vmem:[%s2154_s0 + $0x74] ss:$8 sps:$4 sm:$0xff]  }
  0x34   :  { %v1730_v37 = vld [vmem:[%s2154_s0 + $0x160] ss:$8 sps:$4 sm:$0xff]   ;;  %v1733_v39 = vld [vmem:[%s2154_s0 + $0x174] ss:$8 sps:$4 sm:$0xff]   ;;  %v1735_v40 = vld [vmem:[%s2154_s0 + $0x70] ss:$8 sps:$4 sm:$0xff]  }
  0x35   :  { %593 = vmatmul.mubr.bf16.gmra.mxu0 %v1705_v20  ;;  %721 = vmatmul.mubr.bf16.gmra.mxu1 %v1706_v21  ;;  %v1736_v41 = vld [vmem:[%s2154_s0 + $0x170] ss:$8 sps:$4 sm:$0xff]   ;;  %v1737_v42 = vld [vmem:[%s2154_s0 + $0x84] ss:$8 sps:$4 sm:$0xff]   ;;  %v1741_v44 = vld [vmem:[%s2154_s0 + $0x80] ss:$8 sps:$4 sm:$0xff]  }
  0x36   :  { %1310 = vmatprep.mubr.msk.bf16.mxu0 %vm447_vm0, %v1707_v22  ;;  %1326 = vmatprep.mubr.msk.bf16.mxu1 %vm447_vm0, %v1709_v23  ;;  %v1739_v43 = vld [vmem:[%s2154_s0 + $0x184] ss:$8 sps:$4 sm:$0xff]   ;;  %v1742_v45 = vld [vmem:[%s2154_s0 + $0x180] ss:$8 sps:$4 sm:$0xff]   ;;  %v1743_v46 = vld [vmem:[%s2154_s0 + $0x94] ss:$8 sps:$4 sm:$0xff]  }
  0x37   :  { %v1745_v47 = vld [vmem:[%s2154_s0 + $0x194] ss:$8 sps:$4 sm:$0xff]   ;;  %v1747_v48 = vld [vmem:[%s2154_s0 + $0x90] ss:$8 sps:$4 sm:$0xff]   ;;  %v1749_v50 = vld [vmem:[%s2154_s0 + $0xa4] ss:$8 sps:$4 sm:$0xff]  }
  0x38   :  { %v1748_v49 = vld [vmem:[%s2154_s0 + $0x190] ss:$8 sps:$4 sm:$0xff]   ;;  %v1751_v51 = vld [vmem:[%s2154_s0 + $0x1a4] ss:$8 sps:$4 sm:$0xff]   ;;  %v1753_v52 = vld [vmem:[%s2154_s0 + $0xa0] ss:$8 sps:$4 sm:$0xff]  }
  0x39   :  { %v1754_v53 = vld [vmem:[%s2154_s0 + $0x1a0] ss:$8 sps:$4 sm:$0xff]   ;;  %v1755_v54 = vld [vmem:[%s2154_s0 + $0xb4] ss:$8 sps:$4 sm:$0xff]   ;;  %v1759_v56 = vld [vmem:[%s2154_s0 + $0xb0] ss:$8 sps:$4 sm:$0xff]  }
  0x3a   :  { %v1757_v55 = vld [vmem:[%s2154_s0 + $0x1b4] ss:$8 sps:$4 sm:$0xff]   ;;  %v1760_v57 = vld [vmem:[%s2154_s0 + $0x1b0] ss:$8 sps:$4 sm:$0xff]   ;;  %v1761_v58 = vld [vmem:[%s2154_s0 + $0xc4] ss:$8 sps:$4 sm:$0xff]  }
  0x3b   :  { %v1763_v59 = vld [vmem:[%s2154_s0 + $0x1c4] ss:$8 sps:$4 sm:$0xff]   ;;  %v1765_v60 = vld [vmem:[%s2154_s0 + $0xc0] ss:$8 sps:$4 sm:$0xff]   ;;  %v1767_v62 = vld [vmem:[%s2154_s0 + $0xd4] ss:$8 sps:$4 sm:$0xff]  }
  0x3c   :  { %v1766_v61 = vld [vmem:[%s2154_s0 + $0x1c0] ss:$8 sps:$4 sm:$0xff]   ;;  %v1769_v63 = vld [vmem:[%s2154_s0 + $0x1d4] ss:$8 sps:$4 sm:$0xff]   ;;  %v1771_v0 = vld [vmem:[%s2154_s0 + $0xd0] ss:$8 sps:$4 sm:$0xff]  }
  0x3d   :  { %601 = vmatmul.mubr.bf16.gmra.mxu0 %v1711_v24  ;;  %729 = vmatmul.mubr.bf16.gmra.mxu1 %v1712_v25  ;;  %v1772_v1 = vld [vmem:[%s2154_s0 + $0x1d0] ss:$8 sps:$4 sm:$0xff]   ;;  %v1773_v2 = vld [vmem:[%s2154_s0 + $0xe4] ss:$8 sps:$4 sm:$0xff]   ;;  %v1777_v4 = vld [vmem:[%s2154_s0 + $0xe0] ss:$8 sps:$4 sm:$0xff]  }
  0x3e   :  { %1311 = vmatprep.mubr.msk.bf16.mxu0 %vm447_vm0, %v1713_v26  ;;  %1327 = vmatprep.mubr.msk.bf16.mxu1 %vm447_vm0, %v1715_v27  ;;  %v1775_v3 = vld [vmem:[%s2154_s0 + $0x1e4] ss:$8 sps:$4 sm:$0xff]   ;;  %v1778_v5 = vld [vmem:[%s2154_s0 + $0x1e0] ss:$8 sps:$4 sm:$0xff]   ;;  %v1779_v6 = vld [vmem:[%s2154_s0 + $0xf4] ss:$8 sps:$4 sm:$0xff]  }
  0x3f   :  { %v1781_v7 = vld [vmem:[%s2154_s0 + $0x1f4] ss:$8 sps:$4 sm:$0xff]   ;;  %v1783_v8 = vld [vmem:[%s2154_s0 + $0xf0] ss:$8 sps:$4 sm:$0xff]   ;;  %v2085_v10 = vld [vmem:[%s2156_s2] ss:$0 sm:$0xff] }
  0x40   :  { %v1784_v9 = vld [vmem:[%s2154_s0 + $0x1f0] ss:$8 sps:$4 sm:$0xff]   ;;  %s1808_s0 = smov [#allocation2]  }
  0x41   :  { %s1222_s2 = sshll.u32 %s1808_s0, 4  ;;  %s1223_s2 = int_to_ptr.vmem [resolvable:$true] %s1222_s2 }
  0x42   :  { %s1785_s20 = scalar_lea.vmem %s1223_s2, 4096  ;;  %p1790_p1 = scmp.lt.s32.totalorder %s1223_s2, %s1223_s2 }
  0x43   :  { %p1786_p0 = scmp.ne.s32.totalorder %s1223_s2, %s1785_s20  ;;  %p1791_p2 = scmp.lt.s32.totalorder %s1785_s20, %s1785_s20 }
  0x45   :  { %609 = vmatmul.mubr.bf16.gmra.mxu0 %v1717_v28  ;;  %737 = vmatmul.mubr.bf16.gmra.mxu1 %v1718_v29  ;;  %p1792_p3 = por %p1791_p2, %p1790_p1 }
  0x46   :  { %1312 = vmatprep.mubr.msk.bf16.mxu0 %vm447_vm0, %v1719_v30  ;;  %1328 = vmatprep.mubr.msk.bf16.mxu1 %vm447_vm0, %v1721_v31 }
  0x47   :  { %p1793_p4 = pnand %p1792_p3, %p1786_p0 }
  0x4d   :  { %617 = vmatmul.mubr.bf16.gmra.mxu0 %v1723_v32  ;;  %745 = vmatmul.mubr.bf16.gmra.mxu1 %v1724_v33 }
  0x4e   :  { %1313 = vmatprep.mubr.msk.bf16.mxu0 %vm447_vm0, %v1725_v34  ;;  %1329 = vmatprep.mubr.msk.bf16.mxu1 %vm447_vm0, %v1727_v35 }
  0x55   :  { %625 = vmatmul.mubr.bf16.gmra.mxu0 %v1729_v36  ;;  %753 = vmatmul.mubr.bf16.gmra.mxu1 %v1730_v37 }
  0x56   :  { %1314 = vmatprep.mubr.msk.bf16.mxu0 %vm447_vm0, %v1731_v38  ;;  %1330 = vmatprep.mubr.msk.bf16.mxu1 %vm447_vm0, %v1733_v39 }
  0x5d   :  { %633 = vmatmul.mubr.bf16.gmra.mxu0 %v1735_v40  ;;  %761 = vmatmul.mubr.bf16.gmra.mxu1 %v1736_v41 }
  0x5e   :  { %1315 = vmatprep.mubr.msk.bf16.mxu0 %vm447_vm0, %v1737_v42  ;;  %1331 = vmatprep.mubr.msk.bf16.mxu1 %vm447_vm0, %v1739_v43 }
  0x65   :  { %641 = vmatmul.mubr.bf16.gmra.mxu0 %v1741_v44  ;;  %769 = vmatmul.mubr.bf16.gmra.mxu1 %v1742_v45 }
  0x66   :  { %1316 = vmatprep.mubr.msk.bf16.mxu0 %vm447_vm0, %v1743_v46  ;;  %1332 = vmatprep.mubr.msk.bf16.mxu1 %vm447_vm0, %v1745_v47 }
  0x6d   :  { %649 = vmatmul.mubr.bf16.gmra.mxu0 %v1747_v48  ;;  %777 = vmatmul.mubr.bf16.gmra.mxu1 %v1748_v49 }
  0x6e   :  { %1317 = vmatprep.mubr.msk.bf16.mxu0 %vm447_vm0, %v1749_v50  ;;  %1333 = vmatprep.mubr.msk.bf16.mxu1 %vm447_vm0, %v1751_v51 }
  0x75   :  { %657 = vmatmul.mubr.bf16.gmra.mxu0 %v1753_v52  ;;  %785 = vmatmul.mubr.bf16.gmra.mxu1 %v1754_v53 }
  0x76   :  { %1318 = vmatprep.mubr.msk.bf16.mxu0 %vm447_vm0, %v1755_v54  ;;  %1334 = vmatprep.mubr.msk.bf16.mxu1 %vm447_vm0, %v1757_v55 }
  0x7d   :  { %665 = vmatmul.mubr.bf16.gmra.mxu0 %v1759_v56  ;;  %793 = vmatmul.mubr.bf16.gmra.mxu1 %v1760_v57 }
  0x7e   :  { %1319 = vmatprep.mubr.msk.bf16.mxu0 %vm447_vm0, %v1761_v58  ;;  %1335 = vmatprep.mubr.msk.bf16.mxu1 %vm447_vm0, %v1763_v59 }
  0x85   :  { %673 = vmatmul.mubr.bf16.gmra.mxu0 %v1765_v60  ;;  %801 = vmatmul.mubr.bf16.gmra.mxu1 %v1766_v61 }
  0x86   :  { %1320 = vmatprep.mubr.msk.bf16.mxu0 %vm447_vm0, %v1767_v62  ;;  %1336 = vmatprep.mubr.msk.bf16.mxu1 %vm447_vm0, %v1769_v63 }
  0x8d   :  { %681 = vmatmul.mubr.bf16.gmra.mxu0 %v1771_v0  ;;  %809 = vmatmul.mubr.bf16.gmra.mxu1 %v1772_v1 }
  0x8e   :  { %1321 = vmatprep.mubr.msk.bf16.mxu0 %vm447_vm0, %v1773_v2  ;;  %1337 = vmatprep.mubr.msk.bf16.mxu1 %vm447_vm0, %v1775_v3 }
  0x95   :  { %689 = vmatmul.mubr.bf16.gmra.mxu0 %v1777_v4  ;;  %817 = vmatmul.mubr.bf16.gmra.mxu1 %v1778_v5 }
  0x96   :  { %1322 = vmatprep.mubr.msk.bf16.mxu0 %vm447_vm0, %v1779_v6  ;;  %1338 = vmatprep.mubr.msk.bf16.mxu1 %vm447_vm0, %v1781_v7 }
  0x9d   :  { %697 = vmatmul.mubr.bf16.gmra.mxu0 %v1783_v8  ;;  %825 = vmatmul.mubr.bf16.gmra.mxu1 %v1784_v9 }
  0xe5   :  { %v578_v11 = vpop.f32.mrf.mxu0  ;;  %v706_v12 = vpop.f32.mrf.mxu1 }
  0xe6   :  { %v579_v15 = vadd.f32 %v2085_v10, %v578_v11  ;;  %v707_v16 = vadd.f32 %v2085_v10, %v706_v12 }
  0xe7   :  { %v580_v13 = vpop.f32.mrf.mxu0  ;;  %v708_v14 = vpop.f32.mrf.mxu1 }
  0xe8   :  { %v833_v23 = vmax.f32 %v579_v15, 0.0  ;;  %v865_v24 = vmax.f32 %v707_v16, 0.0 }
  0xe9   :  { %v581_v17 = vpop.f32.mrf.mxu0  ;;  %v709_v18 = vpop.f32.mrf.mxu1 }
  0xea   :  { %v582_v19 = vadd.f32 %v2085_v10, %v581_v17  ;;  %v710_v20 = vadd.f32 %v2085_v10, %v709_v18 }
  0xeb   :  { %v583_v21 = vpop.f32.mrf.mxu0  ;;  %v711_v22 = vpop.f32.mrf.mxu1 }
  0xec   :  { %v834_v25 = vmax.f32 %v582_v19, 0.0  ;;  %v866_v26 = vmax.f32 %v710_v20, 0.0 }
  0xed   :  { %v586_v27 = vpop.f32.mrf.mxu0  ;;  %v714_v28 = vpop.f32.mrf.mxu1 }
  0xee   :  { %v1470_v29 = vpack.c.bf16 %v834_v25, %v833_v23  ;;  %v1550_v30 = vpack.c.bf16 %v866_v26, %v865_v24  ;;  %v587_v33 = vadd.f32 %v2085_v10, %v586_v27  ;;  %v715_v34 = vadd.f32 %v2085_v10, %v714_v28 }
  0xef   :  { %v588_v31 = vpop.f32.mrf.mxu0  ;;  %v716_v32 = vpop.f32.mrf.mxu1 }
  0xf0   :  { %1471 = vst [vmem:[#allocation2] sm:$0xff] %v1470_v29   ;;  %1642 = vst [vmem:[#allocation2 + $0x80] sm:$0xff] %v1550_v30   ;;  %v835_v41 = vmax.f32 %v587_v33, 0.0  ;;  %v867_v42 = vmax.f32 %v715_v34, 0.0 }
  0xf1   :  { %v589_v35 = vpop.f32.mrf.mxu0  ;;  %v717_v36 = vpop.f32.mrf.mxu1 }
  0xf2   :  { %v590_v37 = vadd.f32 %v2085_v10, %v589_v35  ;;  %v718_v38 = vadd.f32 %v2085_v10, %v717_v36 }
  0xf3   :  { %v591_v39 = vpop.f32.mrf.mxu0  ;;  %v719_v40 = vpop.f32.mrf.mxu1 }
  0xf4   :  { %v836_v43 = vmax.f32 %v590_v37, 0.0  ;;  %v868_v44 = vmax.f32 %v718_v38, 0.0 }
  0xf5   :  { %v594_v45 = vpop.f32.mrf.mxu0  ;;  %v722_v46 = vpop.f32.mrf.mxu1 }
  0xf6   :  { %v1475_v47 = vpack.c.bf16 %v836_v43, %v835_v41  ;;  %v1555_v48 = vpack.c.bf16 %v868_v44, %v867_v42  ;;  %v595_v51 = vadd.f32 %v2085_v10, %v594_v45  ;;  %v723_v52 = vadd.f32 %v2085_v10, %v722_v46 }
  0xf7   :  { %v596_v49 = vpop.f32.mrf.mxu0  ;;  %v724_v50 = vpop.f32.mrf.mxu1 }
  0xf8   :  { %1627 = vst [vmem:[#allocation2 + $0x8] sm:$0xff] %v1475_v47   ;;  %1643 = vst [vmem:[#allocation2 + $0x88] sm:$0xff] %v1555_v48   ;;  %v837_v59 = vmax.f32 %v595_v51, 0.0  ;;  %v869_v60 = vmax.f32 %v723_v52, 0.0 }
  0xf9   :  { %v597_v53 = vpop.f32.mrf.mxu0  ;;  %v725_v54 = vpop.f32.mrf.mxu1 }
  0xfa   :  { %v598_v55 = vadd.f32 %v2085_v10, %v597_v53  ;;  %v726_v56 = vadd.f32 %v2085_v10, %v725_v54 }
  0xfb   :  { %v599_v57 = vpop.f32.mrf.mxu0  ;;  %v727_v58 = vpop.f32.mrf.mxu1 }
  0xfc   :  { %v838_v61 = vmax.f32 %v598_v55, 0.0  ;;  %v870_v62 = vmax.f32 %v726_v56, 0.0 }
  0xfd   :  { %v602_v63 = vpop.f32.mrf.mxu0  ;;  %v730_v0 = vpop.f32.mrf.mxu1 }
  0xfe   :  { %v1480_v1 = vpack.c.bf16 %v838_v61, %v837_v59  ;;  %v1560_v2 = vpack.c.bf16 %v870_v62, %v869_v60  ;;  %v603_v5 = vadd.f32 %v2085_v10, %v602_v63  ;;  %v731_v6 = vadd.f32 %v2085_v10, %v730_v0 }
  0xff   :  { %v604_v3 = vpop.f32.mrf.mxu0  ;;  %v732_v4 = vpop.f32.mrf.mxu1 }
 0x100   :  { %1628 = vst [vmem:[#allocation2 + $0x10] sm:$0xff] %v1480_v1   ;;  %1644 = vst [vmem:[#allocation2 + $0x90] sm:$0xff] %v1560_v2   ;;  %v839_v14 = vmax.f32 %v603_v5, 0.0  ;;  %v871_v15 = vmax.f32 %v731_v6, 0.0 }
 0x101   :  { %v605_v7 = vpop.f32.mrf.mxu0  ;;  %v733_v8 = vpop.f32.mrf.mxu1 }
 0x102   :  { %v606_v9 = vadd.f32 %v2085_v10, %v605_v7  ;;  %v734_v11 = vadd.f32 %v2085_v10, %v733_v8 }
 0x103   :  { %v607_v12 = vpop.f32.mrf.mxu0  ;;  %v735_v13 = vpop.f32.mrf.mxu1 }
 0x104   :  { %v840_v16 = vmax.f32 %v606_v9, 0.0  ;;  %v872_v17 = vmax.f32 %v734_v11, 0.0 }
 0x105   :  { %v610_v18 = vpop.f32.mrf.mxu0  ;;  %v738_v19 = vpop.f32.mrf.mxu1 }
 0x106   :  { %v1485_v20 = vpack.c.bf16 %v840_v16, %v839_v14  ;;  %v1565_v21 = vpack.c.bf16 %v872_v17, %v871_v15  ;;  %v611_v24 = vadd.f32 %v2085_v10, %v610_v18  ;;  %v739_v25 = vadd.f32 %v2085_v10, %v738_v19 }
 0x107   :  { %v612_v22 = vpop.f32.mrf.mxu0  ;;  %v740_v23 = vpop.f32.mrf.mxu1 }
 0x108   :  { %1629 = vst [vmem:[#allocation2 + $0x18] sm:$0xff] %v1485_v20   ;;  %1645 = vst [vmem:[#allocation2 + $0x98] sm:$0xff] %v1565_v21   ;;  %v841_v32 = vmax.f32 %v611_v24, 0.0  ;;  %v873_v33 = vmax.f32 %v739_v25, 0.0 }
 0x109   :  { %v613_v26 = vpop.f32.mrf.mxu0  ;;  %v741_v27 = vpop.f32.mrf.mxu1 }
 0x10a   :  { %v614_v28 = vadd.f32 %v2085_v10, %v613_v26  ;;  %v742_v29 = vadd.f32 %v2085_v10, %v741_v27 }
 0x10b   :  { %v615_v30 = vpop.f32.mrf.mxu0  ;;  %v743_v31 = vpop.f32.mrf.mxu1 }
 0x10c   :  { %v842_v34 = vmax.f32 %v614_v28, 0.0  ;;  %v874_v35 = vmax.f32 %v742_v29, 0.0 }
 0x10d   :  { %v618_v36 = vpop.f32.mrf.mxu0  ;;  %v746_v37 = vpop.f32.mrf.mxu1 }
 0x10e   :  { %v1490_v38 = vpack.c.bf16 %v842_v34, %v841_v32  ;;  %v1570_v39 = vpack.c.bf16 %v874_v35, %v873_v33  ;;  %v619_v42 = vadd.f32 %v2085_v10, %v618_v36  ;;  %v747_v43 = vadd.f32 %v2085_v10, %v746_v37 }
 0x10f   :  { %v620_v40 = vpop.f32.mrf.mxu0  ;;  %v748_v41 = vpop.f32.mrf.mxu1 }
 0x110   :  { %1630 = vst [vmem:[#allocation2 + $0x20] sm:$0xff] %v1490_v38   ;;  %1646 = vst [vmem:[#allocation2 + $0xa0] sm:$0xff] %v1570_v39   ;;  %v843_v50 = vmax.f32 %v619_v42, 0.0  ;;  %v875_v51 = vmax.f32 %v747_v43, 0.0 }
 0x111   :  { %v621_v44 = vpop.f32.mrf.mxu0  ;;  %v749_v45 = vpop.f32.mrf.mxu1 }
 0x112   :  { %v622_v46 = vadd.f32 %v2085_v10, %v621_v44  ;;  %v750_v47 = vadd.f32 %v2085_v10, %v749_v45 }
 0x113   :  { %v623_v48 = vpop.f32.mrf.mxu0  ;;  %v751_v49 = vpop.f32.mrf.mxu1 }
 0x114   :  { %v844_v52 = vmax.f32 %v622_v46, 0.0  ;;  %v876_v53 = vmax.f32 %v750_v47, 0.0 }
 0x115   :  { %v626_v54 = vpop.f32.mrf.mxu0  ;;  %v754_v55 = vpop.f32.mrf.mxu1 }
 0x116   :  { %v1495_v56 = vpack.c.bf16 %v844_v52, %v843_v50  ;;  %v1575_v57 = vpack.c.bf16 %v876_v53, %v875_v51  ;;  %v627_v60 = vadd.f32 %v2085_v10, %v626_v54  ;;  %v755_v61 = vadd.f32 %v2085_v10, %v754_v55 }
 0x117   :  { %v628_v58 = vpop.f32.mrf.mxu0  ;;  %v756_v59 = vpop.f32.mrf.mxu1 }
 0x118   :  { %1631 = vst [vmem:[#allocation2 + $0x28] sm:$0xff] %v1495_v56   ;;  %1647 = vst [vmem:[#allocation2 + $0xa8] sm:$0xff] %v1575_v57   ;;  %v845_v4 = vmax.f32 %v627_v60, 0.0  ;;  %v877_v5 = vmax.f32 %v755_v61, 0.0 }
 0x119   :  { %v629_v62 = vpop.f32.mrf.mxu0  ;;  %v757_v63 = vpop.f32.mrf.mxu1 }
 0x11a   :  { %v630_v0 = vadd.f32 %v2085_v10, %v629_v62  ;;  %v758_v1 = vadd.f32 %v2085_v10, %v757_v63 }
 0x11b   :  { %v631_v2 = vpop.f32.mrf.mxu0  ;;  %v759_v3 = vpop.f32.mrf.mxu1 }
 0x11c   :  { %v846_v6 = vmax.f32 %v630_v0, 0.0  ;;  %v878_v7 = vmax.f32 %v758_v1, 0.0 }
 0x11d   :  { %v634_v8 = vpop.f32.mrf.mxu0  ;;  %v762_v9 = vpop.f32.mrf.mxu1 }
 0x11e   :  { %v1500_v11 = vpack.c.bf16 %v846_v6, %v845_v4  ;;  %v1580_v12 = vpack.c.bf16 %v878_v7, %v877_v5  ;;  %v635_v15 = vadd.f32 %v2085_v10, %v634_v8  ;;  %v763_v16 = vadd.f32 %v2085_v10, %v762_v9 }
 0x11f   :  { %v636_v13 = vpop.f32.mrf.mxu0  ;;  %v764_v14 = vpop.f32.mrf.mxu1 }
 0x120   :  { %1632 = vst [vmem:[#allocation2 + $0x30] sm:$0xff] %v1500_v11   ;;  %1648 = vst [vmem:[#allocation2 + $0xb0] sm:$0xff] %v1580_v12   ;;  %v847_v23 = vmax.f32 %v635_v15, 0.0  ;;  %v879_v24 = vmax.f32 %v763_v16, 0.0 }
 0x121   :  { %v637_v17 = vpop.f32.mrf.mxu0  ;;  %v765_v18 = vpop.f32.mrf.mxu1 }
 0x122   :  { %v638_v19 = vadd.f32 %v2085_v10, %v637_v17  ;;  %v766_v20 = vadd.f32 %v2085_v10, %v765_v18 }
 0x123   :  { %v639_v21 = vpop.f32.mrf.mxu0  ;;  %v767_v22 = vpop.f32.mrf.mxu1 }
 0x124   :  { %v848_v25 = vmax.f32 %v638_v19, 0.0  ;;  %v880_v26 = vmax.f32 %v766_v20, 0.0 }
 0x125   :  { %v642_v27 = vpop.f32.mrf.mxu0  ;;  %v770_v28 = vpop.f32.mrf.mxu1 }
 0x126   :  { %v1505_v29 = vpack.c.bf16 %v848_v25, %v847_v23  ;;  %v1585_v30 = vpack.c.bf16 %v880_v26, %v879_v24  ;;  %v643_v33 = vadd.f32 %v2085_v10, %v642_v27  ;;  %v771_v34 = vadd.f32 %v2085_v10, %v770_v28 }
 0x127   :  { %v644_v31 = vpop.f32.mrf.mxu0  ;;  %v772_v32 = vpop.f32.mrf.mxu1 }
 0x128   :  { %1633 = vst [vmem:[#allocation2 + $0x38] sm:$0xff] %v1505_v29   ;;  %1649 = vst [vmem:[#allocation2 + $0xb8] sm:$0xff] %v1585_v30   ;;  %v849_v41 = vmax.f32 %v643_v33, 0.0  ;;  %v881_v42 = vmax.f32 %v771_v34, 0.0 }
 0x129   :  { %v645_v35 = vpop.f32.mrf.mxu0  ;;  %v773_v36 = vpop.f32.mrf.mxu1 }
 0x12a   :  { %v646_v37 = vadd.f32 %v2085_v10, %v645_v35  ;;  %v774_v38 = vadd.f32 %v2085_v10, %v773_v36 }
 0x12b   :  { %v647_v39 = vpop.f32.mrf.mxu0  ;;  %v775_v40 = vpop.f32.mrf.mxu1 }
 0x12c   :  { %v850_v43 = vmax.f32 %v646_v37, 0.0  ;;  %v882_v44 = vmax.f32 %v774_v38, 0.0 }
 0x12d   :  { %v650_v45 = vpop.f32.mrf.mxu0  ;;  %v778_v46 = vpop.f32.mrf.mxu1 }
 0x12e   :  { %v1510_v47 = vpack.c.bf16 %v850_v43, %v849_v41  ;;  %v1590_v48 = vpack.c.bf16 %v882_v44, %v881_v42  ;;  %v651_v51 = vadd.f32 %v2085_v10, %v650_v45  ;;  %v779_v52 = vadd.f32 %v2085_v10, %v778_v46 }
 0x12f   :  { %v652_v49 = vpop.f32.mrf.mxu0  ;;  %v780_v50 = vpop.f32.mrf.mxu1 }
 0x130   :  { %1634 = vst [vmem:[#allocation2 + $0x40] sm:$0xff] %v1510_v47   ;;  %1650 = vst [vmem:[#allocation2 + $0xc0] sm:$0xff] %v1590_v48   ;;  %v851_v59 = vmax.f32 %v651_v51, 0.0  ;;  %v883_v60 = vmax.f32 %v779_v52, 0.0 }
 0x131   :  { %v653_v53 = vpop.f32.mrf.mxu0  ;;  %v781_v54 = vpop.f32.mrf.mxu1 }
 0x132   :  { %v654_v55 = vadd.f32 %v2085_v10, %v653_v53  ;;  %v782_v56 = vadd.f32 %v2085_v10, %v781_v54 }
 0x133   :  { %v655_v57 = vpop.f32.mrf.mxu0  ;;  %v783_v58 = vpop.f32.mrf.mxu1 }
 0x134   :  { %v852_v61 = vmax.f32 %v654_v55, 0.0  ;;  %v884_v62 = vmax.f32 %v782_v56, 0.0 }
 0x135   :  { %v658_v63 = vpop.f32.mrf.mxu0  ;;  %v786_v0 = vpop.f32.mrf.mxu1 }
 0x136   :  { %v1515_v1 = vpack.c.bf16 %v852_v61, %v851_v59  ;;  %v1595_v2 = vpack.c.bf16 %v884_v62, %v883_v60  ;;  %v659_v5 = vadd.f32 %v2085_v10, %v658_v63  ;;  %v787_v6 = vadd.f32 %v2085_v10, %v786_v0 }
 0x137   :  { %v660_v3 = vpop.f32.mrf.mxu0  ;;  %v788_v4 = vpop.f32.mrf.mxu1 }
 0x138   :  { %1635 = vst [vmem:[#allocation2 + $0x48] sm:$0xff] %v1515_v1   ;;  %1651 = vst [vmem:[#allocation2 + $0xc8] sm:$0xff] %v1595_v2   ;;  %v853_v14 = vmax.f32 %v659_v5, 0.0  ;;  %v885_v15 = vmax.f32 %v787_v6, 0.0 }
 0x139   :  { %v661_v7 = vpop.f32.mrf.mxu0  ;;  %v789_v8 = vpop.f32.mrf.mxu1 }
 0x13a   :  { %v662_v9 = vadd.f32 %v2085_v10, %v661_v7  ;;  %v790_v11 = vadd.f32 %v2085_v10, %v789_v8 }
 0x13b   :  { %v663_v12 = vpop.f32.mrf.mxu0  ;;  %v791_v13 = vpop.f32.mrf.mxu1 }
 0x13c   :  { %v854_v16 = vmax.f32 %v662_v9, 0.0  ;;  %v886_v17 = vmax.f32 %v790_v11, 0.0 }
 0x13d   :  { %v666_v18 = vpop.f32.mrf.mxu0  ;;  %v794_v19 = vpop.f32.mrf.mxu1 }
 0x13e   :  { %v1520_v20 = vpack.c.bf16 %v854_v16, %v853_v14  ;;  %v1600_v21 = vpack.c.bf16 %v886_v17, %v885_v15  ;;  %v667_v24 = vadd.f32 %v2085_v10, %v666_v18  ;;  %v795_v25 = vadd.f32 %v2085_v10, %v794_v19 }
 0x13f   :  { %v668_v22 = vpop.f32.mrf.mxu0  ;;  %v796_v23 = vpop.f32.mrf.mxu1 }
 0x140   :  { %1636 = vst [vmem:[#allocation2 + $0x50] sm:$0xff] %v1520_v20   ;;  %1652 = vst [vmem:[#allocation2 + $0xd0] sm:$0xff] %v1600_v21   ;;  %v855_v32 = vmax.f32 %v667_v24, 0.0  ;;  %v887_v33 = vmax.f32 %v795_v25, 0.0 }
 0x141   :  { %v669_v26 = vpop.f32.mrf.mxu0  ;;  %v797_v27 = vpop.f32.mrf.mxu1 }
 0x142   :  { %v670_v28 = vadd.f32 %v2085_v10, %v669_v26  ;;  %v798_v29 = vadd.f32 %v2085_v10, %v797_v27 }
 0x143   :  { %v671_v30 = vpop.f32.mrf.mxu0  ;;  %v799_v31 = vpop.f32.mrf.mxu1 }
 0x144   :  { %v856_v34 = vmax.f32 %v670_v28, 0.0  ;;  %v888_v35 = vmax.f32 %v798_v29, 0.0 }
 0x145   :  { %v674_v36 = vpop.f32.mrf.mxu0  ;;  %v802_v37 = vpop.f32.mrf.mxu1 }
 0x146   :  { %v1525_v38 = vpack.c.bf16 %v856_v34, %v855_v32  ;;  %v1605_v39 = vpack.c.bf16 %v888_v35, %v887_v33  ;;  %v675_v42 = vadd.f32 %v2085_v10, %v674_v36  ;;  %v803_v43 = vadd.f32 %v2085_v10, %v802_v37 }
 0x147   :  { %v676_v40 = vpop.f32.mrf.mxu0  ;;  %v804_v41 = vpop.f32.mrf.mxu1 }
 0x148   :  { %1637 = vst [vmem:[#allocation2 + $0x58] sm:$0xff] %v1525_v38   ;;  %1653 = vst [vmem:[#allocation2 + $0xd8] sm:$0xff] %v1605_v39   ;;  %v857_v50 = vmax.f32 %v675_v42, 0.0  ;;  %v889_v51 = vmax.f32 %v803_v43, 0.0 }
 0x149   :  { %v677_v44 = vpop.f32.mrf.mxu0  ;;  %v805_v45 = vpop.f32.mrf.mxu1 }
 0x14a   :  { %v678_v46 = vadd.f32 %v2085_v10, %v677_v44  ;;  %v806_v47 = vadd.f32 %v2085_v10, %v805_v45 }
 0x14b   :  { %v679_v48 = vpop.f32.mrf.mxu0  ;;  %v807_v49 = vpop.f32.mrf.mxu1 }
 0x14c   :  { %v858_v52 = vmax.f32 %v678_v46, 0.0  ;;  %v890_v53 = vmax.f32 %v806_v47, 0.0 }
 0x14d   :  { %v682_v54 = vpop.f32.mrf.mxu0  ;;  %v810_v55 = vpop.f32.mrf.mxu1 }
 0x14e   :  { %v1530_v56 = vpack.c.bf16 %v858_v52, %v857_v50  ;;  %v1610_v57 = vpack.c.bf16 %v890_v53, %v889_v51  ;;  %v683_v60 = vadd.f32 %v2085_v10, %v682_v54  ;;  %v811_v61 = vadd.f32 %v2085_v10, %v810_v55 }
 0x14f   :  { %v684_v58 = vpop.f32.mrf.mxu0  ;;  %v812_v59 = vpop.f32.mrf.mxu1 }
 0x150   :  { %1638 = vst [vmem:[#allocation2 + $0x60] sm:$0xff] %v1530_v56   ;;  %1654 = vst [vmem:[#allocation2 + $0xe0] sm:$0xff] %v1610_v57   ;;  %v859_v4 = vmax.f32 %v683_v60, 0.0  ;;  %v891_v5 = vmax.f32 %v811_v61, 0.0 }
 0x151   :  { %v685_v62 = vpop.f32.mrf.mxu0  ;;  %v813_v63 = vpop.f32.mrf.mxu1 }
 0x152   :  { %v686_v0 = vadd.f32 %v2085_v10, %v685_v62  ;;  %v814_v1 = vadd.f32 %v2085_v10, %v813_v63 }
 0x153   :  { %v687_v2 = vpop.f32.mrf.mxu0  ;;  %v815_v3 = vpop.f32.mrf.mxu1 }
 0x154   :  { %v860_v6 = vmax.f32 %v686_v0, 0.0  ;;  %v892_v7 = vmax.f32 %v814_v1, 0.0 }
 0x155   :  { %v690_v8 = vpop.f32.mrf.mxu0  ;;  %v818_v9 = vpop.f32.mrf.mxu1 }
 0x156   :  { %v1535_v11 = vpack.c.bf16 %v860_v6, %v859_v4  ;;  %v1615_v12 = vpack.c.bf16 %v892_v7, %v891_v5  ;;  %v691_v15 = vadd.f32 %v2085_v10, %v690_v8  ;;  %v819_v16 = vadd.f32 %v2085_v10, %v818_v9 }
 0x157   :  { %v692_v13 = vpop.f32.mrf.mxu0  ;;  %v820_v14 = vpop.f32.mrf.mxu1 }
 0x158   :  { %1639 = vst [vmem:[#allocation2 + $0x68] sm:$0xff] %v1535_v11   ;;  %1655 = vst [vmem:[#allocation2 + $0xe8] sm:$0xff] %v1615_v12   ;;  %v861_v23 = vmax.f32 %v691_v15, 0.0  ;;  %v893_v24 = vmax.f32 %v819_v16, 0.0 }
 0x159   :  { %v693_v17 = vpop.f32.mrf.mxu0  ;;  %v821_v18 = vpop.f32.mrf.mxu1 }
 0x15a   :  { %v694_v19 = vadd.f32 %v2085_v10, %v693_v17  ;;  %v822_v20 = vadd.f32 %v2085_v10, %v821_v18 }
 0x15b   :  { %v695_v21 = vpop.f32.mrf.mxu0  ;;  %v823_v22 = vpop.f32.mrf.mxu1 }
 0x15c   :  { %v862_v25 = vmax.f32 %v694_v19, 0.0  ;;  %v894_v26 = vmax.f32 %v822_v20, 0.0 }
 0x15d   :  { %v698_v27 = vpop.f32.mrf.mxu0  ;;  %v826_v28 = vpop.f32.mrf.mxu1 }
 0x15e   :  { %v1540_v29 = vpack.c.bf16 %v862_v25, %v861_v23  ;;  %v1620_v30 = vpack.c.bf16 %v894_v26, %v893_v24  ;;  %v699_v33 = vadd.f32 %v2085_v10, %v698_v27  ;;  %v827_v34 = vadd.f32 %v2085_v10, %v826_v28 }
 0x15f   :  { %v700_v31 = vpop.f32.mrf.mxu0  ;;  %v828_v32 = vpop.f32.mrf.mxu1 }
 0x160   :  { %1640 = vst [vmem:[#allocation2 + $0x70] sm:$0xff] %v1540_v29   ;;  %1656 = vst [vmem:[#allocation2 + $0xf0] sm:$0xff] %v1620_v30   ;;  %v863_v41 = vmax.f32 %v699_v33, 0.0  ;;  %v895_v42 = vmax.f32 %v827_v34, 0.0 }
 0x161   :  { %v701_v35 = vpop.f32.mrf.mxu0  ;;  %v829_v36 = vpop.f32.mrf.mxu1 }
 0x162   :  { %v702_v37 = vadd.f32 %v2085_v10, %v701_v35  ;;  %v830_v38 = vadd.f32 %v2085_v10, %v829_v36 }
 0x163   :  { %v703_v39 = vpop.f32.mrf.mxu0  ;;  %v831_v40 = vpop.f32.mrf.mxu1 }
 0x164   :  { %v864_v43 = vmax.f32 %v702_v37, 0.0  ;;  %v896_v44 = vmax.f32 %v830_v38, 0.0 }
 0x166   :  { %v1545_v45 = vpack.c.bf16 %v864_v43, %v863_v41  ;;  %v1625_v46 = vpack.c.bf16 %v896_v44, %v895_v42 }
 0x168   :  { %1641 = vst [vmem:[#allocation2 + $0x78] sm:$0xff] %v1545_v45   ;;  %1657 = vst [vmem:[#allocation2 + $0xf8] sm:$0xff] %v1625_v46  }
 0x169   :  { %1796 = shalt.err (!%p1793_p4)
}
 0x16a   :  { %s1809_s21 = smov 64   ;;  %s1810_s22 = smov 4  }
 0x16b   :  { %1228 = dma.vmem_to_hbm [thread:$0]  %s1223_s2, 4096, %s2157_s3, [#allocation3], %s1809_s21, %s1809_s21, %s1810_s22  }
 0x16c   :  { %1805 = dma.done.wait [#allocation3], 4096  }
 0x16d   :  { %1806 = vsyncadd [#allocation3], 4294963200 }
 0x16e   :  { %1232 = vsyncpa [#allocation3], 1 }

</bundles_post_ra>
